<compile_context>
chip_gen: v5e
topology: v5e:2x2
jax: 0.10.0
libtpu: 0.0.40
codegen_flags: <defaults>
</compile_context>

<pallas_src>
import jax
import jax.numpy as jnp
from jax.experimental import pallas as pl
from jax.experimental.pallas import tpu as pltpu

INPUT_SIZE = 784
HIDDEN_SIZE = 100
NUM_CLASSES = 10

H_PAD = 128   # hidden 100 -> 128 lanes
C_PAD = 128   # classes 10 -> 128 lanes (lane-dense unmasked output stores)


def _round_up(n, m):
    return (n + m - 1) // m * m


def mlp_kernel(x_ref, w1_ref, b1_ref, w2_ref, b2_ref, w3_ref, b3_ref, o_ref):
    # x arrives bf16 straight from HBM (no in-kernel downcast of the big operand).
    # bf16 MXU inputs, f32 accumulation; bias-add / ReLU stay f32 on the VPU.
    h = jnp.dot(x_ref[...], w1_ref[...], preferred_element_type=jnp.float32)
    h = jnp.maximum(h + b1_ref[...], 0.0)

    h = jnp.dot(h.astype(jnp.bfloat16), w2_ref[...],
                preferred_element_type=jnp.float32)
    h = jnp.maximum(h + b2_ref[...], 0.0)

    out = jnp.dot(h.astype(jnp.bfloat16), w3_ref[...],
                  preferred_element_type=jnp.float32)
    o_ref[...] = (out + b3_ref[...]).astype(o_ref.dtype)


def pack_params(w1, b1, w2, b2, w3, b3):
    """Zero-pad params to lane-dense shapes; weights -> bf16, biases stay f32.

    w1: (784, 100) -> (784, 128) bf16   (no K padding: K stays 784)
    w2: (100, 100) -> (128, 128) bf16
    w3: (100,  10) -> (128, 128) bf16
    Zero weight/bias padding keeps padded hidden lanes exactly 0 through
    bias + ReLU, so padded columns contribute nothing to later layers.
    """
    def pad_w(w, rows, cols):
        return (jnp.zeros((rows, cols), jnp.float32)
                .at[: w.shape[0], : w.shape[1]].set(w)
                .astype(jnp.bfloat16))

    def pad_b(b, cols):
        return jnp.zeros((1, cols), jnp.float32).at[0, : b.shape[0]].set(b)

    return (pad_w(w1, INPUT_SIZE, H_PAD), pad_b(b1, H_PAD),
            pad_w(w2, H_PAD, H_PAD), pad_b(b2, H_PAD),
            pad_w(w3, H_PAD, C_PAD), pad_b(b3, C_PAD))


def _batch_tile(B):
    """Batch tile (multiple of 16 for bf16 sublane packing).

    Large tiles (up to 512) amortize per-grid-step overhead (~85% of HBM roofline
    at 512 in measured sweeps); for mid-sized batches keep >= 2 grid steps so both
    v7x TensorCores get work under ("parallel",).
    """
    if B <= 32:
        return _round_up(B, 16)
    return min(512, _round_up(pl.cdiv(B, 2), 16))


@jax.jit
def neural_net_forward(x, w1p, b1p, w2p, b2p, w3p, b3p):
    B = x.shape[0]
    tm = _batch_tile(B)
    b_pad = _round_up(B, tm)

    # Stream x as bf16. If x is already bf16 and the batch divides the tile this is
    # a no-op; otherwise it's a single half-width cast (+ batch pad) pass.
    if b_pad == B:
        x_in = x if x.dtype == jnp.bfloat16 else x.astype(jnp.bfloat16)
    else:
        x_in = (jnp.zeros((b_pad, INPUT_SIZE), jnp.bfloat16)
                .at[:B, :].set(x.astype(jnp.bfloat16)))

    # Constant index_map -> weights/biases are DMA'd to VMEM once and stay
    # resident across all batch tiles.
    resident = lambda shape: pl.BlockSpec(shape, lambda i: (0, 0))

    out_pad = pl.pallas_call(
        mlp_kernel,
        out_shape=jax.ShapeDtypeStruct((b_pad, C_PAD), jnp.float32),
        grid=(b_pad // tm,),
        in_specs=[
            pl.BlockSpec((tm, INPUT_SIZE), lambda i: (i, 0)),  # x: tiled over batch
            resident(w1p.shape), resident(b1p.shape),
            resident(w2p.shape), resident(b2p.shape),
            resident(w3p.shape), resident(b3p.shape),
        ],
        out_specs=pl.BlockSpec((tm, C_PAD), lambda i: (i, 0)),
        compiler_params=pltpu.CompilerParams(
            dimension_semantics=("parallel",)),   # v7x: 2 TCs split batch tiles
    )(x_in, w1p, b1p, w2p, b2p, w3p, b3p)

    return out_pad[:B, :NUM_CLASSES]


def init_params(key):
    """Deterministic init mimicking PyTorch nn.Linear default (U(+/- 1/sqrt(fan_in)))."""
    ks = jax.random.split(key, 6)

    def linear(kw, kb, fan_in, fan_out):
        bound = 1.0 / jnp.sqrt(fan_in)
        # stored as (in, out) so the kernel computes x @ W
        w = jax.random.uniform(kw, (fan_in, fan_out), jnp.float32, -bound, bound)
        b = jax.random.uniform(kb, (fan_out,), jnp.float32, -bound, bound)
        return w, b

    w1, b1 = linear(ks[0], ks[1], INPUT_SIZE, HIDDEN_SIZE)
    w2, b2 = linear(ks[2], ks[3], HIDDEN_SIZE, HIDDEN_SIZE)
    w3, b3 = linear(ks[4], ks[5], HIDDEN_SIZE, NUM_CLASSES)
    return w1, b1, w2, b2, w3, b3


def reference_forward(x, w1, b1, w2, b2, w3, b3):
    # Numerically faithful to the kernel: x, the hidden activations, and the
    # weights are all rounded to bf16 at each MXU input; accumulation, bias add
    # and ReLU stay f32.
    bf = lambda a: a.astype(jnp.bfloat16).astype(jnp.float32)
    h = jnp.maximum(bf(x) @ bf(w1) + b1, 0.0)
    h = jnp.maximum(bf(h) @ bf(w2) + b2, 0.0)
    return bf(h) @ bf(w3) + b3


if __name__ == "__main__":
    key = jax.random.PRNGKey(0)
    k_x, k_p = jax.random.split(key)

    B = 8
    x = jax.random.normal(k_x, (B, INPUT_SIZE), jnp.float32)
    params = init_params(k_p)
    packed = pack_params(*params)

    out = neural_net_forward(x, *packed)
    out = jax.block_until_ready(out)

    ref = reference_forward(x, *params)
    assert out.shape == (B, NUM_CLASSES)
    # bf16 weights / bf16 MXU inputs -> compare at bf16-level tolerance.
    assert jnp.allclose(out, ref, atol=2e-2, rtol=2e-2), float(
        jnp.max(jnp.abs(out - ref)))

    print("KERNEL_OK")
</pallas_src>

<mosaic_0001>
module attributes {stable_mosaic.version = 11 : i64} {
  func.func @mlp_kernel(%arg0: i32, %arg1: memref<16x784xbf16, #tpu.memory_space<vmem>>, %arg2: memref<784x128xbf16, #tpu.memory_space<vmem>>, %arg3: memref<1x128xf32, #tpu.memory_space<vmem>>, %arg4: memref<128x128xbf16, #tpu.memory_space<vmem>>, %arg5: memref<1x128xf32, #tpu.memory_space<vmem>>, %arg6: memref<128x128xbf16, #tpu.memory_space<vmem>>, %arg7: memref<1x128xf32, #tpu.memory_space<vmem>>, %arg8: memref<16x128xf32, #tpu.memory_space<vmem>>) attributes {dimension_semantics = [#tpu.dimension_semantics<parallel>], iteration_bounds = array<i64: 1>, scalar_prefetch = 0 : i64, scratch_operands = 0 : i64, tpu.core_type = #tpu.core_type<tc>, window_params = [{transform_indices = @transform_0, window_bounds = array<i64: 16, 784>}, {pipeline_mode = #tpu.pipeline_mode<synchronous>, transform_indices = @transform_1, window_bounds = array<i64: 784, 128>}, {pipeline_mode = #tpu.pipeline_mode<synchronous>, transform_indices = @transform_2, window_bounds = array<i64: 1, 128>}, {pipeline_mode = #tpu.pipeline_mode<synchronous>, transform_indices = @transform_3, window_bounds = array<i64: 128, 128>}, {pipeline_mode = #tpu.pipeline_mode<synchronous>, transform_indices = @transform_4, window_bounds = array<i64: 1, 128>}, {pipeline_mode = #tpu.pipeline_mode<synchronous>, transform_indices = @transform_5, window_bounds = array<i64: 128, 128>}, {pipeline_mode = #tpu.pipeline_mode<synchronous>, transform_indices = @transform_6, window_bounds = array<i64: 1, 128>}, {transform_indices = @transform_7, window_bounds = array<i64: 16, 128>}]} {
    %c0 = arith.constant 0 : index
    %c0_0 = arith.constant 0 : index
    %0 = vector.load %arg1[%c0, %c0_0] : memref<16x784xbf16, #tpu.memory_space<vmem>>, vector<16x784xbf16>
    %c0_1 = arith.constant 0 : index
    %c0_2 = arith.constant 0 : index
    %1 = vector.load %arg2[%c0_1, %c0_2] : memref<784x128xbf16, #tpu.memory_space<vmem>>, vector<784x128xbf16>
    %cst = arith.constant dense<0.000000e+00> : vector<16x128xf32>
    %2 = tpu.matmul %0, %1, %cst {dimension_numbers = #tpu.dot_dimension_numbers<[1], [0], [0], [1], [0, 0, 1, 1], [], []>} : vector<16x784xbf16>, vector<784x128xbf16>, vector<16x128xf32> -> vector<16x128xf32>
    %c0_3 = arith.constant 0 : index
    %c0_4 = arith.constant 0 : index
    %3 = vector.load %arg3[%c0_3, %c0_4] : memref<1x128xf32, #tpu.memory_space<vmem>>, vector<1x128xf32>
    %4 = vector.broadcast %3 : vector<1x128xf32> to vector<16x128xf32>
    %5 = arith.addf %2, %4 : vector<16x128xf32>
    %cst_5 = arith.constant 0.000000e+00 : f32
    %6 = vector.broadcast %cst_5 : f32 to vector<16x128xf32>
    %7 = arith.maximumf %5, %6 : vector<16x128xf32>
    %8 = arith.truncf %7 : vector<16x128xf32> to vector<16x128xbf16>
    %c0_6 = arith.constant 0 : index
    %c0_7 = arith.constant 0 : index
    %9 = vector.load %arg4[%c0_6, %c0_7] : memref<128x128xbf16, #tpu.memory_space<vmem>>, vector<128x128xbf16>
    %cst_8 = arith.constant dense<0.000000e+00> : vector<16x128xf32>
    %10 = tpu.matmul %8, %9, %cst_8 {dimension_numbers = #tpu.dot_dimension_numbers<[1], [0], [0], [1], [0, 0, 1, 1], [], []>} : vector<16x128xbf16>, vector<128x128xbf16>, vector<16x128xf32> -> vector<16x128xf32>
    %c0_9 = arith.constant 0 : index
    %c0_10 = arith.constant 0 : index
    %11 = vector.load %arg5[%c0_9, %c0_10] : memref<1x128xf32, #tpu.memory_space<vmem>>, vector<1x128xf32>
    %12 = vector.broadcast %11 : vector<1x128xf32> to vector<16x128xf32>
    %13 = arith.addf %10, %12 : vector<16x128xf32>
    %cst_11 = arith.constant 0.000000e+00 : f32
    %14 = vector.broadcast %cst_11 : f32 to vector<16x128xf32>
    %15 = arith.maximumf %13, %14 : vector<16x128xf32>
    %16 = arith.truncf %15 : vector<16x128xf32> to vector<16x128xbf16>
    %c0_12 = arith.constant 0 : index
    %c0_13 = arith.constant 0 : index
    %17 = vector.load %arg6[%c0_12, %c0_13] : memref<128x128xbf16, #tpu.memory_space<vmem>>, vector<128x128xbf16>
    %cst_14 = arith.constant dense<0.000000e+00> : vector<16x128xf32>
    %18 = tpu.matmul %16, %17, %cst_14 {dimension_numbers = #tpu.dot_dimension_numbers<[1], [0], [0], [1], [0, 0, 1, 1], [], []>} : vector<16x128xbf16>, vector<128x128xbf16>, vector<16x128xf32> -> vector<16x128xf32>
    %c0_15 = arith.constant 0 : index
    %c0_16 = arith.constant 0 : index
    %19 = vector.load %arg7[%c0_15, %c0_16] : memref<1x128xf32, #tpu.memory_space<vmem>>, vector<1x128xf32>
    %20 = vector.broadcast %19 : vector<1x128xf32> to vector<16x128xf32>
    %21 = arith.addf %18, %20 : vector<16x128xf32>
    %c0_17 = arith.constant 0 : index
    %c0_18 = arith.constant 0 : index
    %22 = vector.load %arg8[%c0_17, %c0_18] : memref<16x128xf32, #tpu.memory_space<vmem>>, vector<16x128xf32>
    tpu.vector_store %arg8[%c0_17, %c0_18], %21 {strides = array<i32>} : memref<16x128xf32, #tpu.memory_space<vmem>>, vector<16x128xf32>,
    return
  }
  func.func @transform_0(%arg0: i32) -> (i32, i32) {
    %c0_i32 = arith.constant 0 : i32
    %c0_i32_0 = arith.constant 0 : i32
    return %arg0, %c0_i32 : i32, i32
  }
  func.func @transform_1(%arg0: i32) -> (i32, i32) {
    %c0_i32 = arith.constant 0 : i32
    %c0_i32_0 = arith.constant 0 : i32
    %c0_i32_1 = arith.constant 0 : i32
    return %c0_i32, %c0_i32_0 : i32, i32
  }
  func.func @transform_2(%arg0: i32) -> (i32, i32) {
    %c0_i32 = arith.constant 0 : i32
    %c0_i32_0 = arith.constant 0 : i32
    %c0_i32_1 = arith.constant 0 : i32
    return %c0_i32, %c0_i32_0 : i32, i32
  }
  func.func @transform_3(%arg0: i32) -> (i32, i32) {
    %c0_i32 = arith.constant 0 : i32
    %c0_i32_0 = arith.constant 0 : i32
    %c0_i32_1 = arith.constant 0 : i32
    return %c0_i32, %c0_i32_0 : i32, i32
  }
  func.func @transform_4(%arg0: i32) -> (i32, i32) {
    %c0_i32 = arith.constant 0 : i32
    %c0_i32_0 = arith.constant 0 : i32
    %c0_i32_1 = arith.constant 0 : i32
    return %c0_i32, %c0_i32_0 : i32, i32
  }
  func.func @transform_5(%arg0: i32) -> (i32, i32) {
    %c0_i32 = arith.constant 0 : i32
    %c0_i32_0 = arith.constant 0 : i32
    %c0_i32_1 = arith.constant 0 : i32
    return %c0_i32, %c0_i32_0 : i32, i32
  }
  func.func @transform_6(%arg0: i32) -> (i32, i32) {
    %c0_i32 = arith.constant 0 : i32
    %c0_i32_0 = arith.constant 0 : i32
    %c0_i32_1 = arith.constant 0 : i32
    return %c0_i32, %c0_i32_0 : i32, i32
  }
  func.func @transform_7(%arg0: i32) -> (i32, i32) {
    %c0_i32 = arith.constant 0 : i32
    %c0_i32_0 = arith.constant 0 : i32
    return %arg0, %c0_i32 : i32, i32
  }
}

</mosaic_0001>

<bundles_post_ra>
// kernel: neural_net_forward.1
= control target key start
LH: loop header
LB: loop body
LE: loop exit
PB: predicated region body
PF: predicated region fallthrough
CT: control target
= control target key end

     0   :  { %12 = vsyncpa [#allocation3], 0  ;;  %s1154_s27 = smov [#allocation2]   ;;  %s1155_s29 = smov 64   ;;  %s1305_s0 = inlined_call_operand.vmem [shape: bf16[16,784], index: 0, kind: input, shape index: {}]   ;;  %s1306_s1 = inlined_call_operand.hbm [shape: bf16[784,128], index: 1, kind: input, shape index: {}]   ;;  %s1307_s2 = inlined_call_operand.vmem [shape: f32[1,128], index: 2, kind: input, shape index: {}]   ;;  %s1308_s3 = inlined_call_operand.vmem [shape: bf16[128,128], index: 3, kind: input, shape index: {}]   ;;  %s1309_s4 = inlined_call_operand.vmem [shape: f32[1,128], index: 4, kind: input, shape index: {}]   ;;  %s1310_s5 = inlined_call_operand.vmem [shape: bf16[128,128], index: 5, kind: input, shape index: {}]   ;;  %s1311_s6 = inlined_call_operand.vmem [shape: f32[1,128], index: 6, kind: input, shape index: {}]   ;;  %s1312_s7 = inlined_call_operand.vmem [shape: f32[16,128], index: 7, kind: output, shape index: {}]  }
   0x1   :  { %s19_s26 = sshll.u32 %s1306_s1, 4  ;;  %s21_s28 = sshll.u32 %s1154_s27, 4  ;;  %s20_s26 = int_to_ptr.hbm [resolvable:$true] %s19_s26  ;;  %s22_s28 = int_to_ptr.vmem [resolvable:$true] %s21_s28 }
   0x2   :  { %s1156_s30 = smov 4  }
   0x3   :  { %27 = dma.hbm_to_vmem [thread:$0]  %s20_s26, 6272, %s22_s28, [#allocation3], %s1155_s29, %s1155_s29, %s1156_s30  }
   0x4   :  { %1152 = dma.done.wait [#allocation3], 6272  }
   0x5   :  { %1153 = vsyncadd [#allocation3], 4294961024  ;;  %v1064_v0 = vld [vmem:[#allocation2 + $0x38] sm:$0xff]  ;;  %v1063_v4 = vld [vmem:[#allocation2 + $0x30] sm:$0xff]  ;;  %vm482_vm0 = vcmask 130048  }
   0x6   :  { %v1072_v1 = vld [vmem:[#allocation2 + $0x78] sm:$0xff]  ;;  %486 = vmatpush.bf16.msra.mxu0 %v1064_v0  ;;  %v1071_v5 = vld [vmem:[#allocation2 + $0x70] sm:$0xff]  ;;  %v1062_v8 = vld [vmem:[#allocation2 + $0x28] sm:$0xff] }
   0x7   :  { %v1080_v2 = vld [vmem:[#allocation2 + $0xb8] sm:$0xff]  ;;  %500 = vmatpush.bf16.msra.mxu1 %v1072_v1  ;;  %v1079_v6 = vld [vmem:[#allocation2 + $0xb0] sm:$0xff]  ;;  %v1070_v9 = vld [vmem:[#allocation2 + $0x68] sm:$0xff] }
   0x8   :  { %v1088_v3 = vld [vmem:[#allocation2 + $0xf8] sm:$0xff]  ;;  %514 = vmatpush.bf16.msra.mxu2 %v1080_v2  ;;  %v1087_v7 = vld [vmem:[#allocation2 + $0xf0] sm:$0xff]  ;;  %v1078_v10 = vld [vmem:[#allocation2 + $0xa8] sm:$0xff] }
   0x9   :  { %528 = vmatpush.bf16.msra.mxu3 %v1088_v3  ;;  %v1086_v11 = vld [vmem:[#allocation2 + $0xe8] sm:$0xff]  ;;  %v1061_v12 = vld [vmem:[#allocation2 + $0x20] sm:$0xff]  ;;  %v1060_v16 = vld [vmem:[#allocation2 + $0x18] sm:$0xff] }
   0xa   :  { %487 = vmatpush.bf16.msra.mxu0 %v1063_v4  ;;  %v1069_v13 = vld [vmem:[#allocation2 + $0x60] sm:$0xff]  ;;  %v1068_v17 = vld [vmem:[#allocation2 + $0x58] sm:$0xff]  ;;  %v1059_v20 = vld [vmem:[#allocation2 + $0x10] sm:$0xff] }
   0xb   :  { %501 = vmatpush.bf16.msra.mxu1 %v1071_v5  ;;  %v1077_v14 = vld [vmem:[#allocation2 + $0xa0] sm:$0xff]  ;;  %v1076_v18 = vld [vmem:[#allocation2 + $0x98] sm:$0xff]  ;;  %v1067_v21 = vld [vmem:[#allocation2 + $0x50] sm:$0xff] }
   0xc   :  { %515 = vmatpush.bf16.msra.mxu2 %v1079_v6  ;;  %v1085_v15 = vld [vmem:[#allocation2 + $0xe0] sm:$0xff]  ;;  %v1084_v19 = vld [vmem:[#allocation2 + $0xd8] sm:$0xff]  ;;  %v1075_v22 = vld [vmem:[#allocation2 + $0x90] sm:$0xff] }
   0xd   :  { %529 = vmatpush.bf16.msra.mxu3 %v1087_v7  ;;  %v1083_v23 = vld [vmem:[#allocation2 + $0xd0] sm:$0xff]  ;;  %v1058_v24 = vld [vmem:[#allocation2 + $0x8] sm:$0xff]  ;;  %v1057_v28 = vld [vmem:[#allocation2] sm:$0xff] }
   0xe   :  { %488 = vmatpush.bf16.msra.mxu0 %v1062_v8  ;;  %v1066_v25 = vld [vmem:[#allocation2 + $0x48] sm:$0xff]  ;;  %v1065_v29 = vld [vmem:[#allocation2 + $0x40] sm:$0xff]  ;;  %v1053_v31 = vld [vmem:[%s1305_s0 + $0x18] sm:$0xf0] }
   0xf   :  { %502 = vmatpush.bf16.msra.mxu1 %v1070_v9  ;;  %v1074_v26 = vld [vmem:[#allocation2 + $0x88] sm:$0xff]  ;;  %v763_v30 = vld [vmem:[%s1305_s0] sm:$0xf]  ;;  %v1050_v32 = vld [vmem:[%s1305_s0 + $0x4] sm:$0xf] }
  0x10   :  { %516 = vmatpush.bf16.msra.mxu2 %v1078_v10  ;;  %v1082_v27 = vld [vmem:[#allocation2 + $0xc8] sm:$0xff]  ;;  %v765_v33 = vld [vmem:[%s1305_s0 + $0x1c] sm:$0xf0]  ;;  %v1096_v34 = vld [vmem:[#allocation2 + $0x138] sm:$0xff]  ;;  %v764_v40 = vor.u32 %v1053_v31, %v763_v30 }
  0x11   :  { %530 = vmatpush.bf16.msra.mxu3 %v1086_v11  ;;  %v1104_v35 = vld [vmem:[#allocation2 + $0x178] sm:$0xff]  ;;  %v1073_v36 = vld [vmem:[#allocation2 + $0x80] sm:$0xff]  ;;  %v771_v38 = vld [vmem:[%s1305_s0 + $0x8] sm:$0xf]  ;;  %v768_v43 = vor.u32 %v1050_v32, %v765_v33 }
  0x12   :  { %489 = vmatpush.bf16.msra.mxu0 %v1061_v12  ;;  %v1081_v37 = vld [vmem:[#allocation2 + $0xc0] sm:$0xff]  ;;  %v1051_v41 = vld [vmem:[%s1305_s0 + $0xc] sm:$0xf]  ;;  %v773_v42 = vld [vmem:[%s1305_s0 + $0x24] sm:$0xf0] }
  0x13   :  { %503 = vmatpush.bf16.msra.mxu1 %v1069_v13  ;;  %v1054_v39 = vld [vmem:[%s1305_s0 + $0x20] sm:$0xf0]  ;;  %v1095_v45 = vld [vmem:[#allocation2 + $0x130] sm:$0xff]  ;;  %v776_v48 = vor.u32 %v1051_v41, %v773_v42  ;;  %v1094_v49 = vld [vmem:[#allocation2 + $0x128] sm:$0xff] }
  0x14   :  { %517 = vmatpush.bf16.msra.mxu2 %v1077_v14  ;;  %v1105_v44 = vld [vmem:[#allocation2 + $0x180] sm:$0xff]  ;;  %v1103_v46 = vld [vmem:[#allocation2 + $0x170] sm:$0xff]  ;;  %v772_v47 = vor.u32 %v1054_v39, %v771_v38  ;;  %v1102_v50 = vld [vmem:[#allocation2 + $0x168] sm:$0xff] }
  0x15   :  { %531 = vmatpush.bf16.msra.mxu3 %v1085_v15  ;;  %v1093_v51 = vld [vmem:[#allocation2 + $0x120] sm:$0xff]  ;;  %v1092_v53 = vld [vmem:[#allocation2 + $0x118] sm:$0xff]  ;;  %v1056_v56 = vld [vmem:[%s1305_s0 + $0x30] sm:$0xf0] }
  0x16   :  { %490 = vmatpush.bf16.msra.mxu0 %v1060_v16  ;;  %v1101_v52 = vld [vmem:[#allocation2 + $0x160] sm:$0xff]  ;;  %v1100_v54 = vld [vmem:[#allocation2 + $0x158] sm:$0xff]  ;;  %v1091_v57 = vld [vmem:[#allocation2 + $0x110] sm:$0xff] }
  0x17   :  { %504 = vmatpush.bf16.msra.mxu1 %v1068_v17  ;;  %v787_v55 = vld [vmem:[%s1305_s0 + $0x18] sm:$0xf]  ;;  %v1099_v58 = vld [vmem:[#allocation2 + $0x150] sm:$0xff]  ;;  %v1090_v60 = vld [vmem:[#allocation2 + $0x108] sm:$0xff] }
  0x18   :  { %518 = vmatpush.bf16.msra.mxu2 %v1076_v18  ;;  %v788_v59 = vor.u32 %v1056_v56, %v787_v55  ;;  %v1098_v61 = vld [vmem:[#allocation2 + $0x148] sm:$0xff]  ;;  %v1089_v62 = vld [vmem:[#allocation2 + $0x100] sm:$0xff]  ;;  %v779_v0 = vld [vmem:[%s1305_s0 + $0x10] sm:$0xf] }
  0x19   :  { %532 = vmatpush.bf16.msra.mxu3 %v1084_v19  ;;  %v1097_v63 = vld [vmem:[#allocation2 + $0x140] sm:$0xff]  ;;  %v1055_v1 = vld [vmem:[%s1305_s0 + $0x28] sm:$0xf0]  ;;  %v1052_v2 = vld [vmem:[%s1305_s0 + $0x14] sm:$0xf] }
  0x1a   :  { %491 = vmatpush.bf16.msra.mxu0 %v1059_v20  ;;  %v781_v3 = vld [vmem:[%s1305_s0 + $0x2c] sm:$0xf0]  ;;  %v780_v4 = vor.u32 %v1055_v1, %v779_v0  ;;  %v1113_v6 = vld [vmem:[%s1308_s3 + $0x38] sm:$0xff]  ;;  %v1111_v8 = vld [vmem:[%s1308_s3 + $0x28] sm:$0xff] }
  0x1b   :  { %505 = vmatpush.bf16.msra.mxu1 %v1067_v21  ;;  %v784_v5 = vor.u32 %v1052_v2, %v781_v3  ;;  %v1112_v7 = vld [vmem:[%s1308_s3 + $0x30] sm:$0xff]  ;;  %v1110_v9 = vld [vmem:[%s1308_s3 + $0x20] sm:$0xff]  ;;  %v1109_v10 = vld [vmem:[%s1308_s3 + $0x18] sm:$0xff] }
  0x1c   :  { %519 = vmatpush.bf16.msra.mxu2 %v1075_v22  ;;  %v1108_v11 = vld [vmem:[%s1308_s3 + $0x10] sm:$0xff]  ;;  %v1107_v12 = vld [vmem:[%s1308_s3 + $0x8] sm:$0xff]  ;;  %v1106_v16 = vld [vmem:[%s1308_s3] sm:$0xff] }
  0x1d   :  { %533 = vmatpush.bf16.msra.mxu3 %v1083_v23  ;;  %v1125_v17 = vld [vmem:[%s1307_s2] ss:$0 sm:$0xff]  ;;  %v1121_v18 = vld [vmem:[%s1310_s5 + $0x38] sm:$0xff]  ;;  %v1120_v20 = vld [vmem:[%s1310_s5 + $0x30] sm:$0xff] }
  0x1e   :  { %492 = vmatpush.bf16.msra.mxu0 %v1058_v24  ;;  %v1126_v55 = vld [vmem:[%s1309_s4] ss:$0 sm:$0xff] }
  0x1f   :  { %506 = vmatpush.bf16.msra.mxu1 %v1066_v25  ;;  %v1119_v25 = vld [vmem:[%s1310_s5 + $0x28] sm:$0xff] }
  0x20   :  { %520 = vmatpush.bf16.msra.mxu2 %v1074_v26 }
  0x21   :  { %534 = vmatpush.bf16.msra.mxu3 %v1082_v27 }
  0x22   :  { %493 = vmatpush.bf16.msra.mxu0 %v1057_v28 }
  0x23   :  { %507 = vmatpush.bf16.msra.mxu1 %v1065_v29  ;;  %v1118_v29 = vld [vmem:[%s1310_s5 + $0x20] sm:$0xff] }
  0x24   :  { %521 = vmatpush.bf16.msra.mxu2 %v1073_v36 }
  0x25   :  { %535 = vmatpush.bf16.msra.mxu3 %v1081_v37  ;;  %494 = vmatmul.bf16.vlgmr.msra.gmra.mxu0 %v764_v40 }
  0x26   :  { %542 = vmatpush.bf16.msrb.mxu0 %v1096_v34  ;;  %508 = vmatmul.bf16.vlgmr.msra.gmra.mxu1 %v768_v43 }
  0x27   :  { %556 = vmatpush.bf16.msrb.mxu1 %v1104_v35  ;;  %522 = vmatmul.bf16.vlgmr.msra.gmra.mxu2 %v772_v47 }
  0x28   :  { %577 = vmatpush.bf16.msrb.mxu2 %v1105_v44  ;;  %536 = vmatmul.bf16.vlgmr.msra.gmra.mxu3 %v776_v48 }
  0x29   :  { %655 = vmatpush.bf16.msrb.mxu3 %v1113_v6 }
  0x2a   :  { %543 = vmatpush.bf16.msrb.mxu0 %v1095_v45 }
  0x2b   :  { %557 = vmatpush.bf16.msrb.mxu1 %v1103_v46 }
  0x2c   :  { %740 = vmatpush.bf16.msra.mxu2 %v1121_v18 }
  0x2d   :  { %656 = vmatpush.bf16.msrb.mxu3 %v1112_v7 }
  0x2e   :  { %544 = vmatpush.bf16.msrb.mxu0 %v1094_v49 }
  0x2f   :  { %558 = vmatpush.bf16.msrb.mxu1 %v1102_v50  ;;  %v1117_v50 = vld [vmem:[%s1310_s5 + $0x18] sm:$0xff] }
  0x30   :  { %741 = vmatpush.bf16.msra.mxu2 %v1120_v20 }
  0x31   :  { %657 = vmatpush.bf16.msrb.mxu3 %v1111_v8 }
  0x32   :  { %545 = vmatpush.bf16.msrb.mxu0 %v1093_v51  ;;  %v1116_v51 = vld [vmem:[%s1310_s5 + $0x10] sm:$0xff] }
  0x33   :  { %559 = vmatpush.bf16.msrb.mxu1 %v1101_v52  ;;  %v1115_v52 = vld [vmem:[%s1310_s5 + $0x8] sm:$0xff] }
  0x34   :  { %742 = vmatpush.bf16.msra.mxu2 %v1119_v25 }
  0x35   :  { %658 = vmatpush.bf16.msrb.mxu3 %v1110_v9 }
  0x36   :  { %546 = vmatpush.bf16.msrb.mxu0 %v1092_v53  ;;  %v1114_v53 = vld [vmem:[%s1310_s5] sm:$0xff] }
  0x37   :  { %560 = vmatpush.bf16.msrb.mxu1 %v1100_v54  ;;  %985 = vmatmul.msk.bf16.vlgmr.msrb.gmra.mxu2 %vm482_vm0, %v788_v59 }
  0x38   :  { %743 = vmatpush.bf16.msra.mxu2 %v1118_v29 }
  0x39   :  { %659 = vmatpush.bf16.msrb.mxu3 %v1109_v10 }
  0x3a   :  { %547 = vmatpush.bf16.msrb.mxu0 %v1091_v57 }
  0x3b   :  { %561 = vmatpush.bf16.msrb.mxu1 %v1099_v58 }
  0x3c   :  { %744 = vmatpush.bf16.msra.mxu2 %v1117_v50 }
  0x3d   :  { %660 = vmatpush.bf16.msrb.mxu3 %v1108_v11 }
  0x3e   :  { %548 = vmatpush.bf16.msrb.mxu0 %v1090_v60 }
  0x3f   :  { %562 = vmatpush.bf16.msrb.mxu1 %v1098_v61 }
  0x40   :  { %745 = vmatpush.bf16.msra.mxu2 %v1116_v51 }
  0x41   :  { %661 = vmatpush.bf16.msrb.mxu3 %v1107_v12 }
  0x42   :  { %549 = vmatpush.bf16.msrb.mxu0 %v1089_v62  ;;  %v1127_v62 = vld [vmem:[%s1311_s6] ss:$0 sm:$0xff] }
  0x43   :  { %563 = vmatpush.bf16.msrb.mxu1 %v1097_v63 }
  0x44   :  { %746 = vmatpush.bf16.msra.mxu2 %v1115_v52 }
  0x45   :  { %550 = vmatmul.bf16.vlgmr.msrb.gmra.mxu0 %v780_v4  ;;  %662 = vmatpush.bf16.msrb.mxu3 %v1106_v16 }
  0x46   :  { %564 = vmatmul.bf16.vlgmr.msrb.gmra.mxu1 %v784_v5 }
  0x48   :  { %747 = vmatpush.bf16.msra.mxu2 %v1114_v53 }
  0xa2   :  { %v495_v13 = vpop.f32.mrf.mxu0 }
  0xa3   :  { %v509_v14 = vpop.f32.mrf.mxu1  ;;  %v496_v19 = vadd.f32 %v1125_v17, %v495_v13 }
  0xa5   :  { %v510_v24 = vadd.f32 %v509_v14, %v496_v19 }
  0xaa   :  { %v523_v15 = vpop.f32.mrf.mxu2  ;;  %v497_v21 = vpop.f32.mrf.mxu0 }
  0xab   :  { %v511_v22 = vpop.f32.mrf.mxu1  ;;  %v537_v26 = vpop.f32.mrf.mxu3  ;;  %v498_v27 = vadd.f32 %v1125_v17, %v497_v21  ;;  %v524_v28 = vadd.f32 %v523_v15, %v510_v24 }
  0xad   :  { %v512_v30 = vadd.f32 %v511_v22, %v498_v27  ;;  %v538_v33 = vadd.f32 %v537_v26, %v524_v28 }
  0xb2   :  { %v525_v23 = vpop.f32.mrf.mxu2 }
  0xb3   :  { %v526_v35 = vadd.f32 %v525_v23, %v512_v30  ;;  %v539_v37 = vpop.f32.mrf.mxu3 }
  0xb5   :  { %v540_v38 = vadd.f32 %v539_v37, %v526_v35 }
  0xba   :  { %v579_v34 = vpop.f32.mrf.mxu2 }
  0xc2   :  { %v551_v31 = vpop.f32.mrf.mxu0  ;;  %v581_v45 = vpop.f32.mrf.mxu2 }
  0xc3   :  { %v565_v32 = vpop.f32.mrf.mxu1  ;;  %v552_v36 = vadd.f32 %v551_v31, %v538_v33 }
  0xc5   :  { %v566_v39 = vadd.f32 %v565_v32, %v552_v36 }
  0xc7   :  { %v580_v43 = vadd.f32 %v579_v34, %v566_v39 }
  0xc9   :  { %v584_v47 = vmax.f32 %v580_v43, 0.0 }
  0xca   :  { %v553_v40 = vpop.f32.mrf.mxu0 }
  0xcb   :  { %v554_v41 = vadd.f32 %v553_v40, %v540_v38  ;;  %v567_v42 = vpop.f32.mrf.mxu1 }
  0xcd   :  { %v568_v44 = vadd.f32 %v567_v42, %v554_v41 }
  0xcf   :  { %v582_v46 = vadd.f32 %v581_v45, %v568_v44 }
  0xd1   :  { %v585_v48 = vmax.f32 %v582_v46, 0.0 }
  0xd3   :  { %v586_v49 = vpack.c.bf16 %v585_v48, %v584_v47 }
  0xd5   :  { %663 = vmatmul.bf16.vlgmr.msrb.gmra.mxu3 %v586_v49 }
 0x158   :  { %v664_v54 = vpop.f32.mrf.mxu3 }
 0x159   :  { %v665_v56 = vadd.f32 %v1126_v55, %v664_v54 }
 0x15b   :  { %v669_v59 = vmax.f32 %v665_v56, 0.0 }
 0x160   :  { %v666_v57 = vpop.f32.mrf.mxu3 }
 0x161   :  { %v667_v58 = vadd.f32 %v1126_v55, %v666_v57 }
 0x163   :  { %v670_v60 = vmax.f32 %v667_v58, 0.0 }
 0x165   :  { %v671_v61 = vpack.c.bf16 %v670_v60, %v669_v59 }
 0x167   :  { %748 = vmatmul.bf16.vlgmr.msra.gmra.mxu2 %v671_v61 }
 0x1ea   :  { %v749_v63 = vpop.f32.mrf.mxu2 }
 0x1eb   :  { %v750_v0 = vadd.f32 %v1127_v62, %v749_v63 }
 0x1ed   :  { %754 = vst [vmem:[%s1312_s7] sm:$0xff] %v750_v0 }
 0x1f2   :  { %v751_v1 = vpop.f32.mrf.mxu2 }
 0x1f3   :  { %v752_v2 = vadd.f32 %v1127_v62, %v751_v1 }
 0x1f5   :  { %755 = vst [vmem:[%s1312_s7 + $0x8] sm:$0xff] %v752_v2 }
 0x1f6   :  { %760 = vsyncpa [#allocation3], 1 }

</bundles_post_ra>
